<compile_context>
chip_gen: v6e
topology: v6e:2x2x1
jax: 0.10.0
libtpu: 0.0.40
codegen_flags: <defaults>
</compile_context>

<pallas_src>
from functools import partial

import numpy as np

import jax
import jax.numpy as jnp
from jax.experimental import pallas as pl
from jax.experimental.pallas import tpu as pltpu


# ---------------------------------------------------------------------------
# Schedule (host-side numpy, computed once -> no constant recomputation on TPU)
# ---------------------------------------------------------------------------
def cosine_beta_schedule(timesteps: int, s: float = 0.008) -> np.ndarray:
    steps = timesteps + 1
    x = np.linspace(0, steps, steps)
    alphas_cumprod = np.cos((x / steps + s) / (1 + s) * np.pi * 0.5) ** 2
    alphas_cumprod = alphas_cumprod / alphas_cumprod[0]
    betas = 1 - alphas_cumprod[1:] / alphas_cumprod[:-1]
    return np.clip(betas, a_min=0, a_max=0.999)


def _round_up(x: int, m: int) -> int:
    return ((x + m - 1) // m) * m


# Tile-size caps (f32): 256 x 2048 = 2 MiB per buffer; with double buffering
# and 4-5 live arrays this stays comfortably inside the default VMEM budget.
_MAX_BLOCK_ROWS = 256
_MAX_BLOCK_COLS = 2048


# ---------------------------------------------------------------------------
# Kernel 1: q_sample  (elementwise with per-row scalar broadcast)
# ---------------------------------------------------------------------------
def _q_sample_kernel(x0_ref, noise_ref, c1_ref, c2_ref, out_ref):
    # x0/noise/out: (TB, TF) lane-dense tiles; c1/c2: (TB, 1) per-row scalars
    # broadcast along the lane axis on the VPU.
    out_ref[...] = c1_ref[...] * x0_ref[...] + c2_ref[...] * noise_ref[...]


def q_sample_pallas(x2d, noise2d, c1, c2):
    b, f = x2d.shape
    tb = min(b, _MAX_BLOCK_ROWS)
    # Column tiling only when F is 128-aligned; otherwise use the full row
    # (block dim == full array dim is always legal).
    tf = min(f, _MAX_BLOCK_COLS) if (f % 128 == 0) else f
    grid = (pl.cdiv(b, tb), pl.cdiv(f, tf))
    row_spec = pl.BlockSpec((tb, tf), lambda i, j: (i, j))
    coef_spec = pl.BlockSpec((tb, 1), lambda i, j: (i, 0))
    return pl.pallas_call(
        _q_sample_kernel,
        out_shape=jax.ShapeDtypeStruct((b, f), jnp.float32),
        grid=grid,
        in_specs=[row_spec, row_spec, coef_spec, coef_spec],
        out_specs=row_spec,
        # all tiles independent -> megacore sharding on v7x (no-op on v5e/v6e)
        compiler_params=pltpu.CompilerParams(
            dimension_semantics=("parallel", "parallel")),
    )(x2d, noise2d, c1, c2)


# ---------------------------------------------------------------------------
# Kernel 2: sum of squared error (MSE numerator), accumulated across the grid
# ---------------------------------------------------------------------------
def _sq_err_kernel(a_ref, b_ref, out_ref):
    @pl.when(pl.program_id(1) == 0)
    def _():
        out_ref[...] = jnp.zeros_like(out_ref)

    d = a_ref[...] - b_ref[...]
    # Reduce over the sublane (row) axis only; keep a lane-dense (1, TF)
    # accumulator resident across the trailing (reduction) grid axis.
    out_ref[...] += jnp.sum(d * d, axis=0, keepdims=True)


def mse_loss_pallas(a, b):
    assert a.shape == b.shape
    n = a.size
    a2d = a.reshape(a.shape[0], -1).astype(jnp.float32)
    b2d = b.reshape(b.shape[0], -1).astype(jnp.float32)
    rows, f = a2d.shape

    tb = min(rows, _MAX_BLOCK_ROWS)
    tf = min(_round_up(f, 128), _MAX_BLOCK_COLS)
    rows_p = _round_up(rows, tb)
    f_p = _round_up(f, tf)
    # Zero-pad both operands identically: padded entries have zero difference,
    # so they contribute nothing to the sum and every tile/store is exact
    # (unmasked, lane-dense).
    if (rows_p != rows) or (f_p != f):
        pad = ((0, rows_p - rows), (0, f_p - f))
        a2d = jnp.pad(a2d, pad)
        b2d = jnp.pad(b2d, pad)

    grid = (f_p // tf, rows_p // tb)  # reduction (row) axis last
    in_spec = pl.BlockSpec((tb, tf), lambda j, i: (i, j))
    out_spec = pl.BlockSpec((1, tf), lambda j, i: (0, j))
    partial_sums = pl.pallas_call(
        _sq_err_kernel,
        out_shape=jax.ShapeDtypeStruct((1, f_p), jnp.float32),
        grid=grid,
        in_specs=[in_spec, in_spec],
        out_specs=out_spec,
        compiler_params=pltpu.CompilerParams(
            dimension_semantics=("parallel", "arbitrary")),
    )(a2d, b2d)
    # Tiny (1, F_pad) -> scalar finalization + mean normalization in wrapper.
    return jnp.sum(partial_sums) / jnp.float32(n)


# ---------------------------------------------------------------------------
# Module port
# ---------------------------------------------------------------------------
class GaussianDiffusionPallas:
    """JAX/Pallas port of GaussianDiffusion (training forward = p_losses)."""

    def __init__(self, denoise_fn, timesteps: int, trans_dim: int = 4):
        self.denoise_fn = denoise_fn
        self.timesteps = timesteps
        self.trans_dim = trans_dim

        betas = cosine_beta_schedule(timesteps)
        alphas = 1.0 - betas
        alphas_cumprod = np.cumprod(alphas, axis=0)
        alphas_cumprod_prev = np.append(1.0, alphas_cumprod[:-1])
        f32 = partial(jnp.asarray, dtype=jnp.float32)

        # Buffers (same set as the torch module); only the two sqrt_* tables
        # are needed by forward(), the rest are kept for parity.
        self.betas = f32(betas)
        self.alphas_cumprod = f32(alphas_cumprod)
        self.alphas_cumprod_prev = f32(alphas_cumprod_prev)
        self.sqrt_alphas_cumprod = f32(np.sqrt(alphas_cumprod))
        self.sqrt_one_minus_alphas_cumprod = f32(np.sqrt(1.0 - alphas_cumprod))
        self.log_one_minus_alphas_cumprod = f32(np.log(1.0 - alphas_cumprod))
        self.sqrt_recip_alphas_cumprod = f32(np.sqrt(1.0 / alphas_cumprod))
        self.sqrt_recipm1_alphas_cumprod = f32(np.sqrt(1.0 / alphas_cumprod - 1))
        posterior_variance = (
            betas * (1.0 - alphas_cumprod_prev) / (1.0 - alphas_cumprod))
        self.posterior_variance = f32(posterior_variance)
        self.posterior_log_variance_clipped = f32(
            np.log(np.clip(posterior_variance, 1e-20, None)))
        self.posterior_mean_coef1 = f32(
            betas * np.sqrt(alphas_cumprod_prev) / (1.0 - alphas_cumprod))
        self.posterior_mean_coef2 = f32(
            (1.0 - alphas_cumprod_prev) * np.sqrt(alphas) / (1.0 - alphas_cumprod))

    # extract() + q_sample(), with the (H, trans_dim) trailing dims flattened
    # into one lane-dense axis for the kernel.
    def q_sample(self, x_start, t, noise):
        b = x_start.shape[0]
        x2d = x_start.reshape(b, -1).astype(jnp.float32)
        n2d = noise.reshape(b, -1).astype(jnp.float32)
        c1 = jnp.take(self.sqrt_alphas_cumprod, t).reshape(b, 1)
        c2 = jnp.take(self.sqrt_one_minus_alphas_cumprod, t).reshape(b, 1)
        out = q_sample_pallas(x2d, n2d, c1, c2)
        return out.reshape(x_start.shape)

    def p_losses(self, x_start, batch_t, noise):
        x_noisy = self.q_sample(x_start, batch_t, noise)
        noise_hat = self.denoise_fn(x_noisy, batch_t, cond=None)
        assert noise.shape == noise_hat.shape
        return mse_loss_pallas(noise, noise_hat)

    def forward(self, obs, key):
        b = obs.shape[0]
        k_t, k_n = jax.random.split(key)
        batch_t = jax.random.randint(k_t, (b,), 0, self.timesteps)
        noise = jax.random.normal(k_n, obs.shape, dtype=jnp.float32)
        return self.p_losses(obs, batch_t, noise)


# TODO(synk): the real denoiser is TemporalUnet (a separate injected module);
# this deterministic stand-in only makes the diffusion forward pass runnable.
def _stand_in_denoise_fn(x, t, cond=None):
    del cond
    t_b = t.astype(jnp.float32).reshape((-1,) + (1,) * (x.ndim - 1))
    return 0.1 * x + 0.01 * t_b


# ---------------------------------------------------------------------------
# Pure-jnp reference of forward (p_losses) for correctness checking
# ---------------------------------------------------------------------------
def _forward_reference(model, x_start, batch_t, noise):
    nd = x_start.ndim

    def extract(a, t):
        return jnp.take(a, t).reshape((-1,) + (1,) * (nd - 1))

    x_noisy = (extract(model.sqrt_alphas_cumprod, batch_t) * x_start
               + extract(model.sqrt_one_minus_alphas_cumprod, batch_t) * noise)
    noise_hat = model.denoise_fn(x_noisy, batch_t, cond=None)
    return jnp.mean((noise - noise_hat) ** 2)


if __name__ == "__main__":
    # num_envs=8, horizon=32, trans_dim=4  ->  flattened rows of 128 lanes.
    B, H, D = 8, 32, 4
    TIMESTEPS = 100

    key = jax.random.PRNGKey(0)
    k_obs, k_t, k_n, k_fwd = jax.random.split(key, 4)
    obs = jax.random.normal(k_obs, (B, H, D), dtype=jnp.float32)
    batch_t = jax.random.randint(k_t, (B,), 0, TIMESTEPS)
    noise = jax.random.normal(k_n, (B, H, D), dtype=jnp.float32)

    model = GaussianDiffusionPallas(_stand_in_denoise_fn, TIMESTEPS, trans_dim=D)

    # p_losses with explicit (t, noise) so the pure-jnp reference is
    # comparable; jitted so the tiny wrapper ops (gather, pad, final sum)
    # fuse around the two Pallas calls.
    p_losses_jit = jax.jit(model.p_losses)
    loss = jax.block_until_ready(p_losses_jit(obs, batch_t, noise))
    ref = _forward_reference(model, obs, batch_t, noise)
    assert loss.shape == ()
    assert jnp.allclose(loss, ref, atol=1e-5, rtol=1e-5), (loss, ref)

    # Full forward() (training-style: t and noise drawn inside, like torch).
    forward_jit = jax.jit(model.forward)
    fwd_loss = jax.block_until_ready(forward_jit(obs, k_fwd))
    assert fwd_loss.shape == () and bool(jnp.isfinite(fwd_loss))

    # Non-128-aligned / padded-tile path (H*D = 96, B not a row-tile multiple).
    B2, H2, D2 = 5, 24, 4
    obs2 = jax.random.normal(k_obs, (B2, H2, D2), dtype=jnp.float32)
    t2 = jax.random.randint(k_t, (B2,), 0, TIMESTEPS)
    n2 = jax.random.normal(k_n, (B2, H2, D2), dtype=jnp.float32)
    loss2 = jax.block_until_ready(jax.jit(model.p_losses)(obs2, t2, n2))
    ref2 = _forward_reference(model, obs2, t2, n2)
    assert jnp.allclose(loss2, ref2, atol=1e-5, rtol=1e-5), (loss2, ref2)

    print("KERNEL_OK")
</pallas_src>

<mosaic_0001>
module attributes {stable_mosaic.version = 11 : i64} {
  func.func @_q_sample_kernel(%arg0: i32, %arg1: i32, %arg2: memref<8x128xf32, #tpu.memory_space<vmem>>, %arg3: memref<8x128xf32, #tpu.memory_space<vmem>>, %arg4: memref<8x1xf32, #tpu.memory_space<vmem>>, %arg5: memref<8x1xf32, #tpu.memory_space<vmem>>, %arg6: memref<8x128xf32, #tpu.memory_space<vmem>>) attributes {dimension_semantics = [#tpu.dimension_semantics<parallel>, #tpu.dimension_semantics<parallel>], iteration_bounds = array<i64: 1, 1>, scalar_prefetch = 0 : i64, scratch_operands = 0 : i64, tpu.core_type = #tpu.core_type<tc>, window_params = [{transform_indices = @transform_0, window_bounds = array<i64: 8, 128>}, {transform_indices = @transform_1, window_bounds = array<i64: 8, 128>}, {transform_indices = @transform_2, window_bounds = array<i64: 8, 1>}, {transform_indices = @transform_3, window_bounds = array<i64: 8, 1>}, {transform_indices = @transform_4, window_bounds = array<i64: 8, 128>}]} {
    %c0 = arith.constant 0 : index
    %c0_0 = arith.constant 0 : index
    %0 = vector.load %arg4[%c0, %c0_0] : memref<8x1xf32, #tpu.memory_space<vmem>>, vector<8x1xf32>
    %c0_1 = arith.constant 0 : index
    %c0_2 = arith.constant 0 : index
    %1 = vector.load %arg2[%c0_1, %c0_2] : memref<8x128xf32, #tpu.memory_space<vmem>>, vector<8x128xf32>
    %2 = vector.broadcast %0 : vector<8x1xf32> to vector<8x128xf32>
    %3 = arith.mulf %2, %1 : vector<8x128xf32>
    %c0_3 = arith.constant 0 : index
    %c0_4 = arith.constant 0 : index
    %4 = vector.load %arg5[%c0_3, %c0_4] : memref<8x1xf32, #tpu.memory_space<vmem>>, vector<8x1xf32>
    %c0_5 = arith.constant 0 : index
    %c0_6 = arith.constant 0 : index
    %5 = vector.load %arg3[%c0_5, %c0_6] : memref<8x128xf32, #tpu.memory_space<vmem>>, vector<8x128xf32>
    %6 = vector.broadcast %4 : vector<8x1xf32> to vector<8x128xf32>
    %7 = arith.mulf %6, %5 : vector<8x128xf32>
    %8 = arith.addf %3, %7 : vector<8x128xf32>
    %c0_7 = arith.constant 0 : index
    %c0_8 = arith.constant 0 : index
    %9 = vector.load %arg6[%c0_7, %c0_8] : memref<8x128xf32, #tpu.memory_space<vmem>>, vector<8x128xf32>
    tpu.vector_store %arg6[%c0_7, %c0_8], %8 {strides = array<i32>} : memref<8x128xf32, #tpu.memory_space<vmem>>, vector<8x128xf32>,
    return
  }
  func.func @transform_0(%arg0: i32, %arg1: i32) -> (i32, i32) {
    %c0_i32 = arith.constant 0 : i32
    return %arg0, %arg1 : i32, i32
  }
  func.func @transform_1(%arg0: i32, %arg1: i32) -> (i32, i32) {
    %c0_i32 = arith.constant 0 : i32
    return %arg0, %arg1 : i32, i32
  }
  func.func @transform_2(%arg0: i32, %arg1: i32) -> (i32, i32) {
    %c0_i32 = arith.constant 0 : i32
    %c0_i32_0 = arith.constant 0 : i32
    return %arg0, %c0_i32 : i32, i32
  }
  func.func @transform_3(%arg0: i32, %arg1: i32) -> (i32, i32) {
    %c0_i32 = arith.constant 0 : i32
    %c0_i32_0 = arith.constant 0 : i32
    return %arg0, %c0_i32 : i32, i32
  }
  func.func @transform_4(%arg0: i32, %arg1: i32) -> (i32, i32) {
    %c0_i32 = arith.constant 0 : i32
    return %arg0, %arg1 : i32, i32
  }
}

module attributes {stable_mosaic.version = 11 : i64} {
  func.func @_sq_err_kernel(%arg0: i32, %arg1: i32, %arg2: memref<8x128xf32, #tpu.memory_space<vmem>>, %arg3: memref<8x128xf32, #tpu.memory_space<vmem>>, %arg4: memref<1x128xf32, #tpu.memory_space<vmem>>) attributes {dimension_semantics = [#tpu.dimension_semantics<parallel>, #tpu.dimension_semantics<arbitrary>], iteration_bounds = array<i64: 1, 1>, scalar_prefetch = 0 : i64, scratch_operands = 0 : i64, tpu.core_type = #tpu.core_type<tc>, window_params = [{transform_indices = @transform_0, window_bounds = array<i64: 8, 128>}, {transform_indices = @transform_1, window_bounds = array<i64: 8, 128>}, {transform_indices = @transform_2, window_bounds = array<i64: 1, 128>}]} {
    %c0_i32 = arith.constant 0 : i32
    %0 = arith.cmpi eq, %arg1, %c0_i32 : i32
    %1 = arith.extui %0 : i1 to i32
    %c0_i32_0 = arith.constant 0 : i32
    %2 = arith.cmpi ne, %1, %c0_i32_0 : i32
    scf.if %2 {
      %cst_8 = arith.constant 0.000000e+00 : f32
      %12 = vector.broadcast %cst_8 : f32 to vector<1x128xf32>
      %c0_9 = arith.constant 0 : index
      %c0_10 = arith.constant 0 : index
      %13 = vector.load %arg4[%c0_9, %c0_10] : memref<1x128xf32, #tpu.memory_space<vmem>>, vector<1x128xf32>
      tpu.vector_store %arg4[%c0_9, %c0_10], %12 {strides = array<i32>} : memref<1x128xf32, #tpu.memory_space<vmem>>, vector<1x128xf32>,
    } else {
    }
    %c0 = arith.constant 0 : index
    %c0_1 = arith.constant 0 : index
    %3 = vector.load %arg2[%c0, %c0_1] : memref<8x128xf32, #tpu.memory_space<vmem>>, vector<8x128xf32>
    %c0_2 = arith.constant 0 : index
    %c0_3 = arith.constant 0 : index
    %4 = vector.load %arg3[%c0_2, %c0_3] : memref<8x128xf32, #tpu.memory_space<vmem>>, vector<8x128xf32>
    %5 = arith.subf %3, %4 : vector<8x128xf32>
    %c0_4 = arith.constant 0 : index
    %c0_5 = arith.constant 0 : index
    %6 = vector.load %arg4[%c0_4, %c0_5] : memref<1x128xf32, #tpu.memory_space<vmem>>, vector<1x128xf32>
    %7 = arith.mulf %5, %5 : vector<8x128xf32>
    %cst = arith.constant dense<0.000000e+00> : vector<128xf32>
    %8 = vector.multi_reduction <add>, %7, %cst [0] : vector<8x128xf32> to vector<128xf32>
    %9 = vector.shape_cast %8 : vector<128xf32> to vector<1x128xf32>
    %10 = arith.addf %6, %9 : vector<1x128xf32>
    %c0_6 = arith.constant 0 : index
    %c0_7 = arith.constant 0 : index
    %11 = vector.load %arg4[%c0_6, %c0_7] : memref<1x128xf32, #tpu.memory_space<vmem>>, vector<1x128xf32>
    tpu.vector_store %arg4[%c0_6, %c0_7], %10 {strides = array<i32>} : memref<1x128xf32, #tpu.memory_space<vmem>>, vector<1x128xf32>,
    return
  }
  func.func @transform_0(%arg0: i32, %arg1: i32) -> (i32, i32) {
    %c0_i32 = arith.constant 0 : i32
    return %arg1, %arg0 : i32, i32
  }
  func.func @transform_1(%arg0: i32, %arg1: i32) -> (i32, i32) {
    %c0_i32 = arith.constant 0 : i32
    return %arg1, %arg0 : i32, i32
  }
  func.func @transform_2(%arg0: i32, %arg1: i32) -> (i32, i32) {
    %c0_i32 = arith.constant 0 : i32
    %c0_i32_0 = arith.constant 0 : i32
    return %c0_i32, %arg0 : i32, i32
  }
}

</mosaic_0001>

<bundles_post_ra>
// kernel: p_losses.3
= control target key start
LH: loop header
LB: loop body
LE: loop exit
PB: predicated region body
PF: predicated region fallthrough
CT: control target
= control target key end

     0   :  { %v34_v0 = vmov 0.0   ;;  %s65_s2 = inlined_call_operand.vmem [shape: f32[1,128], index: 2, kind: output, shape index: {}]   ;;  %s66_s0 = inlined_call_operand.vmem [shape: f32[8,128], index: 0, kind: input, shape index: {}]   ;;  %s67_s1 = inlined_call_operand.vmem [shape: f32[8,128], index: 1, kind: input, shape index: {}]  }
   0x1   :  { %15 = vst [vmem:[%s65_s2] sm:$0x1] %v34_v0  ;;  %v16_v1 = vld [vmem:[%s66_s0] sm:$0xff] }
   0x2   :  { %v17_v2 = vld [vmem:[%s67_s1] sm:$0xff] }
   0x3   :  { %v18_v3 = vsub.f32 %v16_v1, %v17_v2 }
   0x5   :  { %v20_v4 = vmul.f32 %v18_v3, %v18_v3 }
   0x7   :  { %v21_v5 = vrot.slane %v20_v4, 4 }
   0x8   :  { %v19_v10 = vld [vmem:[%s65_s2] sm:$0x1] }
   0x9   :  { %v22_v6 = vadd.f32 %v21_v5, %v20_v4 }
   0xb   :  { %v23_v7 = vrot.slane %v22_v6, 2 }
   0xd   :  { %v24_v8 = vadd.f32 %v23_v7, %v22_v6 }
   0xf   :  { %v25_v9 = vrot.slane %v24_v8, 1 }
  0x11   :  { %v26_v11 = vadd.f32 %v25_v9, %v24_v8 }
  0x13   :  { %v27_v12 = vadd.f32 %v26_v11, %v19_v10 }
  0x15   :  { %28 = vst [vmem:[%s65_s2] sm:$0x1] %v27_v12 }

// kernel: p_losses.2
= control target key start
LH: loop header
LB: loop body
LE: loop exit
PB: predicated region body
PF: predicated region fallthrough
CT: control target
= control target key end

     0   :  { %v41_v0 = vmov 0   ;;  %s82_s2 = inlined_call_operand.vmem [shape: f32[8,1], index: 2, kind: input, shape index: {}]   ;;  %s83_s3 = inlined_call_operand.vmem [shape: f32[8,1], index: 3, kind: input, shape index: {}]   ;;  %s84_s0 = inlined_call_operand.vmem [shape: f32[8,128], index: 0, kind: input, shape index: {}]   ;;  %s85_s1 = inlined_call_operand.vmem [shape: f32[8,128], index: 1, kind: input, shape index: {}]   ;;  %s86_s4 = inlined_call_operand.vmem [shape: f32[8,128], index: 4, kind: output, shape index: {}]  }
   0x1   :  { %40 = vset.pattern.permute.xlu0 %v41_v0  ;;  %v17_v1 = vld [vmem:[%s82_s2] sm:$0xff] }
   0x2   :  { %21 = vperm.xlu0 %40, %v17_v1   ;;  %v25_v2 = vld [vmem:[%s83_s3] sm:$0xff] }
   0x3   :  { %v18_v4 = vld [vmem:[%s84_s0] sm:$0xff] }
   0x4   :  { %v26_v5 = vld [vmem:[%s85_s1] sm:$0xff] }
   0x6   :  { %29 = vperm.xlu0 %40, %v25_v2  }
  0x7d   :  { %v22_v3 = vpop.permute.xlu0 %21 }
  0x7e   :  { %v24_v7 = vmul.f32 %v22_v3, %v18_v4 }
  0x81   :  { %v30_v6 = vpop.permute.xlu0 %29 }
  0x82   :  { %v32_v8 = vmul.f32 %v30_v6, %v26_v5 }
  0x84   :  { %v33_v9 = vadd.f32 %v32_v8, %v24_v7 }
  0x86   :  { %34 = vst [vmem:[%s86_s4] sm:$0xff] %v33_v9 }

</bundles_post_ra>
